<compile_context>
chip_gen: v5e
topology: v5e:2x2
jax: 0.10.0
libtpu: 0.0.40
codegen_flags: <defaults>
</compile_context>

<pallas_src>
import functools

import jax
import jax.numpy as jnp
from jax.experimental import pallas as pl
from jax.experimental.pallas import tpu as pltpu

N_PAD = 128  # lane-dense class axis (do NOT widen to 256; kernel is HBM-bound)


def _round_up(v, m):
    return ((v + m - 1) // m) * m


def _default_block_b():
    """Pick the batch-tile cap from the chip's VMEM (v5e/v6e: 128 MiB, v7x: 64 MiB)."""
    try:
        info = pltpu.get_tpu_info()
        if getattr(info, "vmem_capacity_bytes", 0) >= 96 * 1024 * 1024:
            return 2048  # v5e / v6e
    except Exception:
        pass
    return 1024          # v7x-safe default


def mlp_kernel(x_ref, w_ref, b_ref, o_ref):
    # x_ref: (TB, K) f32      w_ref: (K, N_PAD) bf16
    # b_ref: (1, N_PAD) f32   (padded classes hold -1e30)
    # o_ref: (TB, N_PAD) f32
    x_bf16 = x_ref[...].astype(jnp.bfloat16)          # VPU cast, hidden under DMA
    logits = jnp.dot(x_bf16, w_ref[...],
                     preferred_element_type=jnp.float32) + b_ref[...]
    # Numerically-stable softmax over the class axis, all in f32.
    m = jnp.max(logits, axis=-1, keepdims=True)
    e = jnp.exp(logits - m)                            # padded classes -> exactly 0
    denom = jnp.sum(e, axis=-1, keepdims=True)
    o_ref[...] = (e / denom).astype(o_ref.dtype)       # exact divide (free, HBM-bound)


@functools.partial(jax.jit, static_argnames=("block_b",))
def mlp_forward(x_nchw, weight, bias, *, block_b=None):
    """x_nchw: (B, C, H, W) with C*H*W == 3200. weight: (N, 3200). bias: (N,).

    Returns softmax(x_flat @ W.T + b) of shape (B, N), float32.
    """
    if block_b is None:
        block_b = _default_block_b()

    B = x_nchw.shape[0]
    N, K = weight.shape

    # torch.flatten(x, start_dim=1); keep native f32 (no extra HBM pass).
    x_flat = x_nchw.reshape(B, -1)
    assert x_flat.shape[1] == K

    # Pre-transpose weight once to (K, N_PAD) bf16 (no in-kernel w.T).
    # Padded class columns are zero-weight with -1e30 f32 bias -> exp() == 0,
    # so the softmax denominator only sees the real N classes.
    w_kn = jnp.zeros((K, N_PAD), jnp.bfloat16)
    w_kn = w_kn.at[:, :N].set(weight.T.astype(jnp.bfloat16))
    b_pad = jnp.full((1, N_PAD), -1e30, jnp.float32)
    b_pad = b_pad.at[0, :N].set(bias.astype(jnp.float32))

    # Batch tiling: no padding of x; Pallas handles the ragged last block.
    #  - aim for >= 2 grid steps (v7x megacore) once B is big enough,
    #  - cap at block_b (VMEM), never below the f32 min-tile sublane count (8).
    TB = min(block_b, _round_up(pl.cdiv(B, 2), 256), _round_up(B, 8))
    TB = max(TB, 8)
    grid = (pl.cdiv(B, TB),)

    # VMEM budget: double-buffered f32 x tile + resident W/bias + out tiles.
    vmem_needed = (2 * TB * K * 4) + (K * N_PAD * 2) + (2 * TB * N_PAD * 4) + (N_PAD * 4)
    vmem_limit = min(vmem_needed + (8 << 20), 96 << 20)

    cost = pl.CostEstimate(
        flops=2 * B * K * N_PAD,
        transcendentals=B * N_PAD,
        bytes_accessed=4 * B * K + 2 * K * N_PAD + 4 * N_PAD + 4 * B * N_PAD,
    )

    out = pl.pallas_call(
        mlp_kernel,
        out_shape=jax.ShapeDtypeStruct((B, N_PAD), jnp.float32),
        grid=grid,
        in_specs=[
            pl.BlockSpec((TB, K), lambda i: (i, 0)),          # x: tiled over batch
            pl.BlockSpec((K, N_PAD), lambda i: (0, 0),        # W: resident, single-buffered
                         pipeline_mode=pl.Buffered(buffer_count=1)),
            pl.BlockSpec((1, N_PAD), lambda i: (0, 0),        # b: resident, single-buffered
                         pipeline_mode=pl.Buffered(buffer_count=1)),
        ],
        out_specs=pl.BlockSpec((TB, N_PAD), lambda i: (i, 0)),
        compiler_params=pltpu.CompilerParams(
            dimension_semantics=("parallel",),
            vmem_limit_bytes=int(vmem_limit),
        ),
        cost_estimate=cost,
    )(x_flat, w_kn, b_pad)

    # Strip class padding (no batch padding was introduced).
    return out[:, :N]


if __name__ == "__main__":
    key = jax.random.PRNGKey(0)
    k_x, k_w, k_b = jax.random.split(key, 3)

    num_classes = 10
    B, C, H, W = 2, 2, 40, 40          # C*H*W = 3200, matching nn.Linear(3200, ...)
    K = C * H * W

    # Deterministic parameter init mirroring the PyTorch module:
    #   weight: nn.init.uniform_ -> U[0, 1)
    #   bias:   nn.Linear default -> U[-1/sqrt(in_features), 1/sqrt(in_features)]
    weight = jax.random.uniform(k_w, (num_classes, K), dtype=jnp.float32)
    bound = 1.0 / (K ** 0.5)
    bias = jax.random.uniform(k_b, (num_classes,), dtype=jnp.float32,
                              minval=-bound, maxval=bound)

    x = jax.random.normal(k_x, (B, C, H, W), dtype=jnp.float32)

    out = mlp_forward(x, weight, bias)
    out = jax.block_until_ready(out)

    # Sanity checks.
    assert out.shape == (B, num_classes)
    # Exact f32 normalization -> rows sum to 1 tightly.
    assert jnp.allclose(jnp.sum(out, axis=1), 1.0, atol=1e-3)

    # Reference (same bf16 casting of the matmul operands, f32 accumulation).
    xf = x.reshape(B, -1)
    ref_logits = jnp.dot(xf.astype(jnp.bfloat16).astype(jnp.float32),
                         weight.astype(jnp.bfloat16).astype(jnp.float32).T) + bias
    ref = jax.nn.softmax(ref_logits, axis=-1)
    assert jnp.allclose(out, ref, atol=2e-2, rtol=2e-2)

    print("KERNEL_OK")
</pallas_src>

<mosaic_0001>
module attributes {stable_mosaic.version = 11 : i64} {
  func.func @mlp_kernel(%arg0: i32, %arg1: memref<8x3200xf32, #tpu.memory_space<vmem>>, %arg2: memref<3200x128xbf16, #tpu.memory_space<vmem>>, %arg3: memref<1x128xf32, #tpu.memory_space<vmem>>, %arg4: memref<8x128xf32, #tpu.memory_space<vmem>>) attributes {dimension_semantics = [#tpu.dimension_semantics<parallel>], iteration_bounds = array<i64: 1>, scalar_prefetch = 0 : i64, scratch_operands = 0 : i64, tpu.core_type = #tpu.core_type<tc>, window_params = [{transform_indices = @transform_0, window_bounds = array<i64: 8, 3200>}, {pipeline_mode = #tpu.pipeline_mode<synchronous>, transform_indices = @transform_1, window_bounds = array<i64: 3200, 128>}, {pipeline_mode = #tpu.pipeline_mode<synchronous>, transform_indices = @transform_2, window_bounds = array<i64: 1, 128>}, {transform_indices = @transform_3, window_bounds = array<i64: 8, 128>}]} {
    %c0 = arith.constant 0 : index
    %c0_0 = arith.constant 0 : index
    %0 = vector.load %arg1[%c0, %c0_0] : memref<8x3200xf32, #tpu.memory_space<vmem>>, vector<8x3200xf32>
    %1 = arith.truncf %0 : vector<8x3200xf32> to vector<8x3200xbf16>
    %c0_1 = arith.constant 0 : index
    %c0_2 = arith.constant 0 : index
    %2 = vector.load %arg2[%c0_1, %c0_2] : memref<3200x128xbf16, #tpu.memory_space<vmem>>, vector<3200x128xbf16>
    %cst = arith.constant dense<0.000000e+00> : vector<8x128xf32>
    %3 = tpu.matmul %1, %2, %cst {dimension_numbers = #tpu.dot_dimension_numbers<[1], [0], [0], [1], [0, 0, 1, 1], [], []>} : vector<8x3200xbf16>, vector<3200x128xbf16>, vector<8x128xf32> -> vector<8x128xf32>
    %c0_3 = arith.constant 0 : index
    %c0_4 = arith.constant 0 : index
    %4 = vector.load %arg3[%c0_3, %c0_4] : memref<1x128xf32, #tpu.memory_space<vmem>>, vector<1x128xf32>
    %5 = vector.broadcast %4 : vector<1x128xf32> to vector<8x128xf32>
    %6 = arith.addf %3, %5 : vector<8x128xf32>
    %cst_5 = arith.constant dense<0xFF800000> : vector<8xf32>
    %7 = vector.multi_reduction <maximumf>, %6, %cst_5 [1] : vector<8x128xf32> to vector<8xf32>
    %8 = vector.shape_cast %7 : vector<8xf32> to vector<8x1xf32>
    %9 = vector.broadcast %8 : vector<8x1xf32> to vector<8x128xf32>
    %10 = arith.subf %6, %9 : vector<8x128xf32>
    %11 = math.exp %10 : vector<8x128xf32>
    %cst_6 = arith.constant dense<0.000000e+00> : vector<8xf32>
    %12 = vector.multi_reduction <add>, %11, %cst_6 [1] : vector<8x128xf32> to vector<8xf32>
    %13 = vector.shape_cast %12 : vector<8xf32> to vector<8x1xf32>
    %14 = vector.broadcast %13 : vector<8x1xf32> to vector<8x128xf32>
    %15 = arith.divf %11, %14 : vector<8x128xf32>
    %c0_7 = arith.constant 0 : index
    %c0_8 = arith.constant 0 : index
    %16 = vector.load %arg4[%c0_7, %c0_8] : memref<8x128xf32, #tpu.memory_space<vmem>>, vector<8x128xf32>
    tpu.vector_store %arg4[%c0_7, %c0_8], %15 {strides = array<i32>} : memref<8x128xf32, #tpu.memory_space<vmem>>, vector<8x128xf32>,
    return
  }
  func.func @transform_0(%arg0: i32) -> (i32, i32) {
    %c0_i32 = arith.constant 0 : i32
    %c0_i32_0 = arith.constant 0 : i32
    return %arg0, %c0_i32 : i32, i32
  }
  func.func @transform_1(%arg0: i32) -> (i32, i32) {
    %c0_i32 = arith.constant 0 : i32
    %c0_i32_0 = arith.constant 0 : i32
    %c0_i32_1 = arith.constant 0 : i32
    return %c0_i32, %c0_i32_0 : i32, i32
  }
  func.func @transform_2(%arg0: i32) -> (i32, i32) {
    %c0_i32 = arith.constant 0 : i32
    %c0_i32_0 = arith.constant 0 : i32
    %c0_i32_1 = arith.constant 0 : i32
    return %c0_i32, %c0_i32_0 : i32, i32
  }
  func.func @transform_3(%arg0: i32) -> (i32, i32) {
    %c0_i32 = arith.constant 0 : i32
    %c0_i32_0 = arith.constant 0 : i32
    return %arg0, %c0_i32 : i32, i32
  }
}

</mosaic_0001>

<bundles_post_ra>
// kernel: mlp_forward.1
= control target key start
LH: loop header
LB: loop body
LE: loop exit
PB: predicated region body
PF: predicated region fallthrough
CT: control target
= control target key end

     0   :  { %8 = vsyncpa [#allocation3], 0  ;;  %s3930_s0 = inlined_call_operand.vmem [shape: f32[2,3200], index: 0, kind: input, shape index: {}]   ;;  %s3931_s1 = inlined_call_operand.vmem [shape: bf16[3200,128], index: 1, kind: input, shape index: {}]   ;;  %s3932_s2 = inlined_call_operand.vmem [shape: f32[1,128], index: 2, kind: input, shape index: {}]   ;;  %s3933_s3 = inlined_call_operand.hbm [shape: f32[2,128], index: 3, kind: output, shape index: {}]  }
   0x1   :  { %v2958_v0 = vld [vmem:[%s3931_s1 + $0x38] sm:$0xff]  ;;  %v2957_v4 = vld [vmem:[%s3931_s1 + $0x30] sm:$0xff]  ;;  %v2956_v8 = vld [vmem:[%s3931_s1 + $0x28] sm:$0xff] }
   0x2   :  { %v2974_v1 = vld [vmem:[%s3931_s1 + $0xb8] sm:$0xff]  ;;  %1785 = vmatpush.bf16.msra.mxu0 %v2958_v0  ;;  %v2973_v5 = vld [vmem:[%s3931_s1 + $0xb0] sm:$0xff]  ;;  %v2972_v9 = vld [vmem:[%s3931_s1 + $0xa8] sm:$0xff] }
   0x3   :  { %v2966_v2 = vld [vmem:[%s3931_s1 + $0x78] sm:$0xff]  ;;  %1811 = vmatpush.bf16.msra.mxu2 %v2974_v1  ;;  %v2965_v6 = vld [vmem:[%s3931_s1 + $0x70] sm:$0xff]  ;;  %v2964_v10 = vld [vmem:[%s3931_s1 + $0x68] sm:$0xff] }
   0x4   :  { %v2982_v3 = vld [vmem:[%s3931_s1 + $0xf8] sm:$0xff]  ;;  %1798 = vmatpush.bf16.msra.mxu1 %v2966_v2  ;;  %v2981_v7 = vld [vmem:[%s3931_s1 + $0xf0] sm:$0xff]  ;;  %v2980_v11 = vld [vmem:[%s3931_s1 + $0xe8] sm:$0xff] }
   0x5   :  { %1824 = vmatpush.bf16.msra.mxu3 %v2982_v3  ;;  %v2955_v12 = vld [vmem:[%s3931_s1 + $0x20] sm:$0xff]  ;;  %v2954_v16 = vld [vmem:[%s3931_s1 + $0x18] sm:$0xff]  ;;  %v2953_v20 = vld [vmem:[%s3931_s1 + $0x10] sm:$0xff] }
   0x6   :  { %1786 = vmatpush.bf16.msra.mxu0 %v2957_v4  ;;  %v2971_v13 = vld [vmem:[%s3931_s1 + $0xa0] sm:$0xff]  ;;  %v2970_v17 = vld [vmem:[%s3931_s1 + $0x98] sm:$0xff]  ;;  %v2969_v21 = vld [vmem:[%s3931_s1 + $0x90] sm:$0xff] }
   0x7   :  { %1812 = vmatpush.bf16.msra.mxu2 %v2973_v5  ;;  %v2963_v14 = vld [vmem:[%s3931_s1 + $0x60] sm:$0xff]  ;;  %v2962_v18 = vld [vmem:[%s3931_s1 + $0x58] sm:$0xff]  ;;  %v2961_v26 = vld [vmem:[%s3931_s1 + $0x50] sm:$0xff] }
   0x8   :  { %1799 = vmatpush.bf16.msra.mxu1 %v2965_v6  ;;  %v2979_v15 = vld [vmem:[%s3931_s1 + $0xe0] sm:$0xff]  ;;  %v2978_v19 = vld [vmem:[%s3931_s1 + $0xd8] sm:$0xff]  ;;  %v2977_v27 = vld [vmem:[%s3931_s1 + $0xd0] sm:$0xff] }
   0x9   :  { %1825 = vmatpush.bf16.msra.mxu3 %v2981_v7  ;;  %v15_v22 = vld [vmem:[%s3930_s0] sm:$0xff]  ;;  %v22_v23 = vld [vmem:[%s3930_s0 + $0x32] sm:$0xff]  ;;  %v2952_v28 = vld [vmem:[%s3931_s1 + $0x8] sm:$0xff] }
   0xa   :  { %1787 = vmatpush.bf16.msra.mxu0 %v2956_v8  ;;  %v29_v24 = vld [vmem:[%s3930_s0 + $0x64] sm:$0xff]  ;;  %v36_v25 = vld [vmem:[%s3930_s0 + $0x96] sm:$0xff]  ;;  %71 = vst [vmem:[#allocation1] ss:$4 sm:$0xff] %v15_v22  ;;  %v30_v34 = vld [vmem:[%s3930_s0 + $0x6c] sm:$0xff] }
   0xb   :  { %1813 = vmatpush.bf16.msra.mxu2 %v2972_v9  ;;  %73 = vst [vmem:[#allocation1 + $0x1] ss:$4 sm:$0xff] %v22_v23  ;;  %v2968_v29 = vld [vmem:[%s3931_s1 + $0x88] sm:$0xff]  ;;  %v23_v33 = vld [vmem:[%s3930_s0 + $0x3a] sm:$0xff]  ;;  %v2989_v50 = vld [vmem:[%s3931_s1 + $0x130] sm:$0xff] }
   0xc   :  { %1800 = vmatpush.bf16.msra.mxu1 %v2964_v10  ;;  %75 = vst [vmem:[#allocation1 + $0x2] ss:$4 sm:$0xff] %v29_v24  ;;  %v2960_v30 = vld [vmem:[%s3931_s1 + $0x48] sm:$0xff]  ;;  %v37_v35 = vld [vmem:[%s3930_s0 + $0x9e] sm:$0xff]  ;;  %v3005_v51 = vld [vmem:[%s3931_s1 + $0x1b0] sm:$0xff] }
   0xd   :  { %1826 = vmatpush.bf16.msra.mxu3 %v2980_v11  ;;  %77 = vst [vmem:[#allocation1 + $0x3] ss:$4 sm:$0xff] %v36_v25  ;;  %v2976_v31 = vld [vmem:[%s3931_s1 + $0xc8] sm:$0xff]  ;;  %v2951_v36 = vld [vmem:[%s3931_s1] sm:$0xff]  ;;  %v2990_v38 = vld [vmem:[%s3931_s1 + $0x138] sm:$0xff] }
   0xe   :  { %1788 = vmatpush.bf16.msra.mxu0 %v2955_v12  ;;  %v16_v32 = vld [vmem:[%s3930_s0 + $0x8] sm:$0xff]  ;;  %v2967_v37 = vld [vmem:[%s3931_s1 + $0x80] sm:$0xff]  ;;  %81 = vst [vmem:[#allocation1 + $0x21] ss:$4 sm:$0xff] %v23_v33  ;;  %v3006_v39 = vld [vmem:[%s3931_s1 + $0x1b8] sm:$0xff] }
   0xf   :  { %1814 = vmatpush.bf16.msra.mxu2 %v2971_v13  ;;  %79 = vst [vmem:[#allocation1 + $0x20] ss:$4 sm:$0xff] %v16_v32  ;;  %v2959_v40 = vld [vmem:[%s3931_s1 + $0x40] sm:$0xff]  ;;  %v2998_v42 = vld [vmem:[%s3931_s1 + $0x178] sm:$0xff]  ;;  %v2997_v54 = vld [vmem:[%s3931_s1 + $0x170] sm:$0xff] }
  0x10   :  { %1801 = vmatpush.bf16.msra.mxu1 %v2963_v14  ;;  %83 = vst [vmem:[#allocation1 + $0x22] ss:$4 sm:$0xff] %v30_v34  ;;  %v2975_v41 = vld [vmem:[%s3931_s1 + $0xc0] sm:$0xff]  ;;  %v3014_v43 = vld [vmem:[%s3931_s1 + $0x1f8] sm:$0xff]  ;;  %v3013_v55 = vld [vmem:[%s3931_s1 + $0x1f0] sm:$0xff] }
  0x11   :  { %1827 = vmatpush.bf16.msra.mxu3 %v2979_v15  ;;  %85 = vst [vmem:[#allocation1 + $0x23] ss:$4 sm:$0xff] %v37_v35  ;;  %v2988_v56 = vld [vmem:[%s3931_s1 + $0x128] sm:$0xff]  ;;  %v18_v62 = vld [vmem:[%s3930_s0 + $0x18] sm:$0xff]  ;;  %v2987_v4 = vld [vmem:[%s3931_s1 + $0x120] sm:$0xff] }
  0x12   :  { %1789 = vmatpush.bf16.msra.mxu0 %v2954_v16  ;;  %v3004_v57 = vld [vmem:[%s3931_s1 + $0x1a8] sm:$0xff]  ;;  %v32_v1 = vld [vmem:[%s3930_s0 + $0x7c] sm:$0xff]  ;;  %v2985_v12 = vld [vmem:[%s3931_s1 + $0x110] sm:$0xff] }
  0x13   :  { %1815 = vmatpush.bf16.msra.mxu2 %v2970_v17  ;;  %v2996_v58 = vld [vmem:[%s3931_s1 + $0x168] sm:$0xff]  ;;  %v3003_v5 = vld [vmem:[%s3931_s1 + $0x1a0] sm:$0xff]  ;;  %v2986_v8 = vld [vmem:[%s3931_s1 + $0x118] sm:$0xff] }
  0x14   :  { %1802 = vmatpush.bf16.msra.mxu1 %v2962_v18  ;;  %v88_v44 = vld.sshfl [vmem:[#allocation1 + $0x10] sm:$0xff pattern:$0x73625140]  ;;  %v86_v45 = vld.sshfl [vmem:[#allocation1] sm:$0xff pattern:$0x73625140] }
  0x15   :  { %1828 = vmatpush.bf16.msra.mxu3 %v2978_v19  ;;  %v89_v46 = vld.sshfl [vmem:[#allocation1 + $0x18] sm:$0xff pattern:$0x73625140]  ;;  %v87_v47 = vld.sshfl [vmem:[#allocation1 + $0x8] sm:$0xff pattern:$0x73625140]  ;;  %v158_v48 = vpack.c.bf16 %v88_v44, %v88_v44  ;;  %v156_v49 = vpack.c.bf16 %v86_v45, %v86_v45 }
  0x16   :  { %1790 = vmatpush.bf16.msra.mxu0 %v2953_v20  ;;  %v159_v52 = vpack.c.bf16 %v89_v46, %v89_v46  ;;  %v157_v53 = vpack.c.bf16 %v87_v47, %v87_v47  ;;  %v25_v63 = vld [vmem:[%s3930_s0 + $0x4a] sm:$0xff]  ;;  %v2995_v6 = vld [vmem:[%s3931_s1 + $0x160] sm:$0xff]  ;;  %v3002_v9 = vld [vmem:[%s3931_s1 + $0x198] sm:$0xff] }
  0x17   :  { %1816 = vmatpush.bf16.msra.mxu2 %v2969_v21  ;;  %v3012_v0 = vld [vmem:[%s3931_s1 + $0x1e8] sm:$0xff]  ;;  %v3011_v7 = vld [vmem:[%s3931_s1 + $0x1e0] sm:$0xff]  ;;  %v2994_v10 = vld [vmem:[%s3931_s1 + $0x158] sm:$0xff] }
  0x18   :  { %1803 = vmatpush.bf16.msra.mxu1 %v2961_v26  ;;  %v3361_v59 = vld.sshfl [vmem:[#allocation1 + $0x30] sm:$0xff pattern:$0x73625140]  ;;  %v3363_v60 = vld.sshfl [vmem:[#allocation1 + $0x20] sm:$0xff pattern:$0x73625140] }
  0x19   :  { %1829 = vmatpush.bf16.msra.mxu3 %v2977_v27  ;;  %v3365_v61 = vld.sshfl [vmem:[#allocation1 + $0x38] sm:$0xff pattern:$0x73625140]  ;;  %v3379_v2 = vld.sshfl [vmem:[#allocation1 + $0x28] sm:$0xff pattern:$0x73625140]  ;;  %v162_v32 = vpack.c.bf16 %v3361_v59, %v3361_v59  ;;  %v160_v33 = vpack.c.bf16 %v3363_v60, %v3363_v60 }
  0x1a   :  { %1791 = vmatpush.bf16.msra.mxu0 %v2952_v28  ;;  %v39_v3 = vld [vmem:[%s3930_s0 + $0xae] sm:$0xff]  ;;  %98 = vst [vmem:[#allocation1 + $0x20] ss:$4 sm:$0xff] %v18_v62  ;;  %v3010_v11 = vld [vmem:[%s3931_s1 + $0x1d8] sm:$0xff]  ;;  %v24_v17 = vld [vmem:[%s3930_s0 + $0x42] sm:$0xff] }
  0x1b   :  { %1817 = vmatpush.bf16.msra.mxu2 %v2968_v29  ;;  %99 = vst [vmem:[#allocation1 + $0x21] ss:$4 sm:$0xff] %v25_v63  ;;  %v3001_v13 = vld [vmem:[%s3931_s1 + $0x190] sm:$0xff]  ;;  %v38_v19 = vld [vmem:[%s3930_s0 + $0xa6] sm:$0xff]  ;;  %v3022_v26 = vld [vmem:[%s3931_s1 + $0x238] sm:$0xff] }
  0x1c   :  { %1804 = vmatpush.bf16.msra.mxu1 %v2960_v30  ;;  %100 = vst [vmem:[#allocation1 + $0x22] ss:$4 sm:$0xff] %v32_v1  ;;  %v2993_v14 = vld [vmem:[%s3931_s1 + $0x150] sm:$0xff]  ;;  %v2984_v20 = vld [vmem:[%s3931_s1 + $0x108] sm:$0xff]  ;;  %v2983_v24 = vld [vmem:[%s3931_s1 + $0x100] sm:$0xff] }
  0x1d   :  { %1830 = vmatpush.bf16.msra.mxu3 %v2976_v31  ;;  %101 = vst [vmem:[#allocation1 + $0x23] ss:$4 sm:$0xff] %v39_v3  ;;  %v3009_v15 = vld [vmem:[%s3931_s1 + $0x1d0] sm:$0xff]  ;;  %v3000_v21 = vld [vmem:[%s3931_s1 + $0x188] sm:$0xff]  ;;  %v2999_v25 = vld [vmem:[%s3931_s1 + $0x180] sm:$0xff] }
  0x1e   :  { %1792 = vmatpush.bf16.msra.mxu0 %v2951_v36  ;;  %v17_v16 = vld [vmem:[%s3930_s0 + $0x10] sm:$0xff]  ;;  %95 = vst [vmem:[#allocation1 + $0x1] ss:$4 sm:$0xff] %v24_v17  ;;  %v2992_v22 = vld [vmem:[%s3931_s1 + $0x148] sm:$0xff]  ;;  %v3038_v27 = vld [vmem:[%s3931_s1 + $0x2b8] sm:$0xff]  ;;  %v163_v36 = vpack.c.bf16 %v3365_v61, %v3365_v61 }
  0x1f   :  { %1818 = vmatpush.bf16.msra.mxu2 %v2967_v37  ;;  %v31_v18 = vld [vmem:[%s3930_s0 + $0x74] sm:$0xff]  ;;  %94 = vst [vmem:[#allocation1] ss:$4 sm:$0xff] %v17_v16  ;;  %v3008_v23 = vld [vmem:[%s3931_s1 + $0x1c8] sm:$0xff]  ;;  %v2991_v28 = vld [vmem:[%s3931_s1 + $0x140] sm:$0xff]  ;;  %v161_v37 = vpack.c.bf16 %v3379_v2, %v3379_v2 }
  0x20   :  { %1805 = vmatpush.bf16.msra.mxu1 %v2959_v40  ;;  %96 = vst [vmem:[#allocation1 + $0x2] ss:$4 sm:$0xff] %v31_v18  ;;  %v3007_v29 = vld [vmem:[%s3931_s1 + $0x1c0] sm:$0xff]  ;;  %v3030_v30 = vld [vmem:[%s3931_s1 + $0x278] sm:$0xff]  ;;  %v3021_v34 = vld [vmem:[%s3931_s1 + $0x230] sm:$0xff] }
  0x21   :  { %1831 = vmatpush.bf16.msra.mxu3 %v2975_v41  ;;  %1793 = vmatmul.bf16.vlgmr.msra.gmra.mxu0 %v156_v49  ;;  %97 = vst [vmem:[#allocation1 + $0x3] ss:$4 sm:$0xff] %v38_v19  ;;  %v3046_v31 = vld [vmem:[%s3931_s1 + $0x2f8] sm:$0xff]  ;;  %v3037_v35 = vld [vmem:[%s3931_s1 + $0x2b0] sm:$0xff]  ;;  %v3020_v40 = vld [vmem:[%s3931_s1 + $0x228] sm:$0xff] }
  0x22   :  { %1837 = vmatpush.bf16.msrb.mxu0 %v2990_v38  ;;  %1819 = vmatmul.bf16.vlgmr.msra.gmra.mxu2 %v158_v48  ;;  %v3029_v38 = vld [vmem:[%s3931_s1 + $0x270] sm:$0xff]  ;;  %v3036_v41 = vld [vmem:[%s3931_s1 + $0x2a8] sm:$0xff]  ;;  %v3019_v44 = vld [vmem:[%s3931_s1 + $0x220] sm:$0xff] }
  0x23   :  { %1863 = vmatpush.bf16.msrb.mxu2 %v3006_v39  ;;  %1806 = vmatmul.bf16.vlgmr.msra.gmra.mxu1 %v157_v53  ;;  %v3045_v39 = vld [vmem:[%s3931_s1 + $0x2f0] sm:$0xff]  ;;  %v3035_v45 = vld [vmem:[%s3931_s1 + $0x2a0] sm:$0xff]  ;;  %v3018_v48 = vld [vmem:[%s3931_s1 + $0x218] sm:$0xff] }
  0x24   :  { %1850 = vmatpush.bf16.msrb.mxu1 %v2998_v42  ;;  %1832 = vmatmul.bf16.vlgmr.msra.gmra.mxu3 %v159_v52  ;;  %v3028_v42 = vld [vmem:[%s3931_s1 + $0x268] sm:$0xff]  ;;  %v3027_v46 = vld [vmem:[%s3931_s1 + $0x260] sm:$0xff]  ;;  %v3034_v49 = vld [vmem:[%s3931_s1 + $0x298] sm:$0xff] }
  0x25   :  { %1876 = vmatpush.bf16.msrb.mxu3 %v3014_v43  ;;  %v3044_v43 = vld [vmem:[%s3931_s1 + $0x2e8] sm:$0xff]  ;;  %v3043_v47 = vld [vmem:[%s3931_s1 + $0x2e0] sm:$0xff]  ;;  %v3017_v52 = vld [vmem:[%s3931_s1 + $0x210] sm:$0xff] }
  0x26   :  { %1838 = vmatpush.bf16.msrb.mxu0 %v2989_v50  ;;  %v3026_v50 = vld [vmem:[%s3931_s1 + $0x258] sm:$0xff]  ;;  %v3033_v53 = vld [vmem:[%s3931_s1 + $0x290] sm:$0xff]  ;;  %v3040_v59 = vld [vmem:[%s3931_s1 + $0x2c8] sm:$0xff] }
  0x27   :  { %1864 = vmatpush.bf16.msrb.mxu2 %v3005_v51  ;;  %v3042_v51 = vld [vmem:[%s3931_s1 + $0x2d8] sm:$0xff]  ;;  %v3015_v60 = vld [vmem:[%s3931_s1 + $0x200] sm:$0xff]  ;;  %v3582_v16 = vld.sshfl [vmem:[#allocation1 + $0x28] sm:$0xff pattern:$0x73625140] }
  0x28   :  { %1851 = vmatpush.bf16.msrb.mxu1 %v2997_v54  ;;  %v3025_v54 = vld [vmem:[%s3931_s1 + $0x250] sm:$0xff]  ;;  %v3031_v61 = vld [vmem:[%s3931_s1 + $0x280] sm:$0xff]  ;;  %v3054_v62 = vld [vmem:[%s3931_s1 + $0x338] sm:$0xff] }
  0x29   :  { %1877 = vmatpush.bf16.msrb.mxu3 %v3013_v55  ;;  %v3041_v55 = vld [vmem:[%s3931_s1 + $0x2d0] sm:$0xff]  ;;  %v102_v63 = vld.sshfl [vmem:[#allocation1] sm:$0xff pattern:$0x73625140]  ;;  %v3070_v1 = vld [vmem:[%s3931_s1 + $0x3b8] sm:$0xff] }
  0x2a   :  { %1839 = vmatpush.bf16.msrb.mxu0 %v2988_v56  ;;  %v3016_v56 = vld [vmem:[%s3931_s1 + $0x208] sm:$0xff]  ;;  %v3023_v2 = vld [vmem:[%s3931_s1 + $0x240] sm:$0xff]  ;;  %v3584_v17 = vld.sshfl [vmem:[#allocation1 + $0x38] sm:$0xff pattern:$0x73625140] }
  0x2b   :  { %1865 = vmatpush.bf16.msrb.mxu2 %v3004_v57  ;;  %v3032_v57 = vld [vmem:[%s3931_s1 + $0x288] sm:$0xff]  ;;  %v3039_v3 = vld [vmem:[%s3931_s1 + $0x2c0] sm:$0xff] }
  0x2c   :  { %1852 = vmatpush.bf16.msrb.mxu1 %v2996_v58  ;;  %v3024_v58 = vld [vmem:[%s3931_s1 + $0x248] sm:$0xff]  ;;  %v27_v19 = vld [vmem:[%s3930_s0 + $0x5a] sm:$0xff] }
  0x2d   :  { %1878 = vmatpush.bf16.msrb.mxu3 %v3012_v0  ;;  %v104_v0 = vld.sshfl [vmem:[#allocation1 + $0x10] sm:$0xff pattern:$0x73625140]  ;;  %v20_v18 = vld [vmem:[%s3930_s0 + $0x28] sm:$0xff] }
  0x2e   :  { %1840 = vmatpush.bf16.msrb.mxu0 %v2987_v4  ;;  %v103_v4 = vld.sshfl [vmem:[#allocation1 + $0x8] sm:$0xff pattern:$0x73625140] }
  0x2f   :  { %1866 = vmatpush.bf16.msrb.mxu2 %v3003_v5  ;;  %v105_v5 = vld.sshfl [vmem:[#allocation1 + $0x18] sm:$0xff pattern:$0x73625140] }
  0x30   :  { %1853 = vmatpush.bf16.msrb.mxu1 %v2995_v6  ;;  %v164_v6 = vpack.c.bf16 %v102_v63, %v102_v63  ;;  %v3109_v63 = vld [vmem:[%s3931_s1 + $0x4f0] sm:$0xff] }
  0x31   :  { %1879 = vmatpush.bf16.msrb.mxu3 %v3011_v7  ;;  %v166_v7 = vpack.c.bf16 %v104_v0, %v104_v0  ;;  %v3084_v0 = vld [vmem:[%s3931_s1 + $0x428] sm:$0xff] }
  0x32   :  { %1841 = vmatpush.bf16.msrb.mxu0 %v2986_v8  ;;  %v3062_v8 = vld [vmem:[%s3931_s1 + $0x378] sm:$0xff] }
  0x33   :  { %1867 = vmatpush.bf16.msrb.mxu2 %v3002_v9  ;;  %v3078_v9 = vld [vmem:[%s3931_s1 + $0x3f8] sm:$0xff] }
  0x34   :  { %1854 = vmatpush.bf16.msrb.mxu1 %v2994_v10  ;;  %v3053_v10 = vld [vmem:[%s3931_s1 + $0x330] sm:$0xff] }
  0x35   :  { %1880 = vmatpush.bf16.msrb.mxu3 %v3010_v11  ;;  %v3069_v11 = vld [vmem:[%s3931_s1 + $0x3b0] sm:$0xff] }
  0x36   :  { %1842 = vmatpush.bf16.msrb.mxu0 %v2985_v12  ;;  %v165_v12 = vpack.c.bf16 %v103_v4, %v103_v4  ;;  %v3083_v4 = vld [vmem:[%s3931_s1 + $0x420] sm:$0xff] }
  0x37   :  { %1868 = vmatpush.bf16.msrb.mxu2 %v3001_v13  ;;  %v167_v13 = vpack.c.bf16 %v105_v5, %v105_v5  ;;  %v3099_v5 = vld [vmem:[%s3931_s1 + $0x4a0] sm:$0xff] }
  0x38   :  { %1855 = vmatpush.bf16.msrb.mxu1 %v2993_v14  ;;  %v3578_v14 = vld.sshfl [vmem:[#allocation1 + $0x20] sm:$0xff pattern:$0x73625140] }
  0x39   :  { %1881 = vmatpush.bf16.msrb.mxu3 %v3009_v15  ;;  %v3580_v15 = vld.sshfl [vmem:[#allocation1 + $0x30] sm:$0xff pattern:$0x73625140] }
  0x3a   :  { %1843 = vmatpush.bf16.msrb.mxu0 %v2984_v20  ;;  %v34_v20 = vld [vmem:[%s3930_s0 + $0x8c] sm:$0xff]  ;;  %114 = vst [vmem:[#allocation1 + $0x20] ss:$4 sm:$0xff] %v20_v18 }
  0x3b   :  { %1869 = vmatpush.bf16.msrb.mxu2 %v3000_v21  ;;  %v3061_v21 = vld [vmem:[%s3931_s1 + $0x370] sm:$0xff]  ;;  %115 = vst [vmem:[#allocation1 + $0x21] ss:$4 sm:$0xff] %v27_v19  ;;  %v3088_v18 = vld [vmem:[%s3931_s1 + $0x448] sm:$0xff] }
  0x3c   :  { %1856 = vmatpush.bf16.msrb.mxu1 %v2992_v22  ;;  %v3077_v22 = vld [vmem:[%s3931_s1 + $0x3f0] sm:$0xff]  ;;  %116 = vst [vmem:[#allocation1 + $0x22] ss:$4 sm:$0xff] %v34_v20  ;;  %v3104_v19 = vld [vmem:[%s3931_s1 + $0x4c8] sm:$0xff]  ;;  %v3079_v20 = vld [vmem:[%s3931_s1 + $0x400] sm:$0xff] }
  0x3d   :  { %1882 = vmatpush.bf16.msrb.mxu3 %v3008_v23  ;;  %v41_v23 = vld [vmem:[%s3930_s0 + $0xbe] sm:$0xff] }
  0x3e   :  { %1844 = vmatpush.bf16.msrb.mxu0 %v2983_v24  ;;  %v3052_v24 = vld [vmem:[%s3931_s1 + $0x328] sm:$0xff]  ;;  %117 = vst [vmem:[#allocation1 + $0x23] ss:$4 sm:$0xff] %v41_v23 }
  0x3f   :  { %1870 = vmatpush.bf16.msrb.mxu2 %v2999_v25  ;;  %v3068_v25 = vld [vmem:[%s3931_s1 + $0x3a8] sm:$0xff] }
  0x40   :  { %1857 = vmatpush.bf16.msrb.mxu1 %v2991_v28  ;;  %v3051_v28 = vld [vmem:[%s3931_s1 + $0x320] sm:$0xff] }
  0x41   :  { %1883 = vmatpush.bf16.msrb.mxu3 %v3007_v29  ;;  %1845 = vmatmul.bf16.vlgmr.msrb.gmra.mxu0 %v160_v33  ;;  %v3067_v29 = vld [vmem:[%s3931_s1 + $0x3a0] sm:$0xff]  ;;  %v3066_v33 = vld [vmem:[%s3931_s1 + $0x398] sm:$0xff] }
  0x42   :  { %1889 = vmatpush.bf16.msra.mxu0 %v3022_v26  ;;  %1871 = vmatmul.bf16.vlgmr.msrb.gmra.mxu2 %v162_v32  ;;  %v3060_v26 = vld [vmem:[%s3931_s1 + $0x368] sm:$0xff]  ;;  %v3050_v32 = vld [vmem:[%s3931_s1 + $0x318] sm:$0xff] }
  0x43   :  { %1915 = vmatpush.bf16.msra.mxu2 %v3038_v27  ;;  %1858 = vmatmul.bf16.vlgmr.msrb.gmra.mxu1 %v161_v37  ;;  %v3076_v27 = vld [vmem:[%s3931_s1 + $0x3e8] sm:$0xff]  ;;  %v3065_v37 = vld [vmem:[%s3931_s1 + $0x390] sm:$0xff] }
  0x44   :  { %1902 = vmatpush.bf16.msra.mxu1 %v3030_v30  ;;  %1884 = vmatmul.bf16.vlgmr.msrb.gmra.mxu3 %v163_v36  ;;  %v3059_v30 = vld [vmem:[%s3931_s1 + $0x360] sm:$0xff]  ;;  %v3049_v36 = vld [vmem:[%s3931_s1 + $0x310] sm:$0xff] }
  0x45   :  { %1928 = vmatpush.bf16.msra.mxu3 %v3046_v31  ;;  %v3075_v31 = vld [vmem:[%s3931_s1 + $0x3e0] sm:$0xff] }
  0x46   :  { %1890 = vmatpush.bf16.msra.mxu0 %v3021_v34  ;;  %v3058_v34 = vld [vmem:[%s3931_s1 + $0x358] sm:$0xff] }
  0x47   :  { %1916 = vmatpush.bf16.msra.mxu2 %v3037_v35  ;;  %v3074_v35 = vld [vmem:[%s3931_s1 + $0x3d8] sm:$0xff] }
  0x48   :  { %1903 = vmatpush.bf16.msra.mxu1 %v3029_v38  ;;  %v3057_v38 = vld [vmem:[%s3931_s1 + $0x350] sm:$0xff] }
  0x49   :  { %1929 = vmatpush.bf16.msra.mxu3 %v3045_v39  ;;  %v3073_v39 = vld [vmem:[%s3931_s1 + $0x3d0] sm:$0xff] }
  0x4a   :  { %1891 = vmatpush.bf16.msra.mxu0 %v3020_v40  ;;  %v19_v40 = vld [vmem:[%s3930_s0 + $0x20] sm:$0xff] }
  0x4b   :  { %1917 = vmatpush.bf16.msra.mxu2 %v3036_v41  ;;  %v26_v41 = vld [vmem:[%s3930_s0 + $0x52] sm:$0xff]  ;;  %110 = vst [vmem:[#allocation1] ss:$4 sm:$0xff] %v19_v40  ;;  %v3116_v40 = vld [vmem:[%s3931_s1 + $0x528] sm:$0xff] }
  0x4c   :  { %1904 = vmatpush.bf16.msra.mxu1 %v3028_v42  ;;  %v33_v42 = vld [vmem:[%s3930_s0 + $0x84] sm:$0xff]  ;;  %111 = vst [vmem:[#allocation1 + $0x1] ss:$4 sm:$0xff] %v26_v41 }
  0x4d   :  { %1930 = vmatpush.bf16.msra.mxu3 %v3044_v43  ;;  %v40_v43 = vld [vmem:[%s3930_s0 + $0xb6] sm:$0xff]  ;;  %112 = vst [vmem:[#allocation1 + $0x2] ss:$4 sm:$0xff] %v33_v42  ;;  %v3132_v41 = vld [vmem:[%s3931_s1 + $0x5a8] sm:$0xff] }
  0x4e   :  { %1892 = vmatpush.bf16.msra.mxu0 %v3019_v44  ;;  %v3048_v44 = vld [vmem:[%s3931_s1 + $0x308] sm:$0xff]  ;;  %113 = vst [vmem:[#allocation1 + $0x3] ss:$4 sm:$0xff] %v40_v43 }
  0x4f   :  { %1918 = vmatpush.bf16.msra.mxu2 %v3035_v45  ;;  %v3064_v45 = vld [vmem:[%s3931_s1 + $0x388] sm:$0xff] }
  0x50   :  { %1905 = vmatpush.bf16.msra.mxu1 %v3027_v46  ;;  %v3056_v46 = vld [vmem:[%s3931_s1 + $0x348] sm:$0xff] }
  0x51   :  { %1931 = vmatpush.bf16.msra.mxu3 %v3043_v47  ;;  %v3072_v47 = vld [vmem:[%s3931_s1 + $0x3c8] sm:$0xff] }
  0x52   :  { %1893 = vmatpush.bf16.msra.mxu0 %v3018_v48  ;;  %v3047_v48 = vld [vmem:[%s3931_s1 + $0x300] sm:$0xff]  ;;  %v3124_v42 = vld [vmem:[%s3931_s1 + $0x568] sm:$0xff] }
  0x53   :  { %1919 = vmatpush.bf16.msra.mxu2 %v3034_v49  ;;  %v3063_v49 = vld [vmem:[%s3931_s1 + $0x380] sm:$0xff]  ;;  %v3140_v43 = vld [vmem:[%s3931_s1 + $0x5e8] sm:$0xff] }
  0x54   :  { %1906 = vmatpush.bf16.msra.mxu1 %v3026_v50  ;;  %v3086_v50 = vld [vmem:[%s3931_s1 + $0x438] sm:$0xff] }
  0x55   :  { %1932 = vmatpush.bf16.msra.mxu3 %v3042_v51  ;;  %v3102_v51 = vld [vmem:[%s3931_s1 + $0x4b8] sm:$0xff]  ;;  %v118_v23 = vld.sshfl [vmem:[#allocation1] sm:$0xff pattern:$0x73625140] }
  0x56   :  { %1894 = vmatpush.bf16.msra.mxu0 %v3017_v52  ;;  %v3055_v52 = vld [vmem:[%s3931_s1 + $0x340] sm:$0xff] }
  0x57   :  { %1920 = vmatpush.bf16.msra.mxu2 %v3033_v53  ;;  %v3071_v53 = vld [vmem:[%s3931_s1 + $0x3c0] sm:$0xff] }
  0x58   :  { %1907 = vmatpush.bf16.msra.mxu1 %v3025_v54  ;;  %v168_v54 = vpack.c.bf16 %v3578_v14, %v3578_v14  ;;  %v3089_v14 = vld [vmem:[%s3931_s1 + $0x450] sm:$0xff] }
  0x59   :  { %1933 = vmatpush.bf16.msra.mxu3 %v3041_v55  ;;  %v170_v55 = vpack.c.bf16 %v3580_v15, %v3580_v15  ;;  %v3105_v15 = vld [vmem:[%s3931_s1 + $0x4d0] sm:$0xff] }
  0x5a   :  { %1895 = vmatpush.bf16.msra.mxu0 %v3016_v56  ;;  %v3094_v56 = vld [vmem:[%s3931_s1 + $0x478] sm:$0xff] }
  0x5b   :  { %1921 = vmatpush.bf16.msra.mxu2 %v3032_v57  ;;  %v3110_v57 = vld [vmem:[%s3931_s1 + $0x4f8] sm:$0xff] }
  0x5c   :  { %1908 = vmatpush.bf16.msra.mxu1 %v3024_v58  ;;  %v169_v58 = vpack.c.bf16 %v3582_v16, %v3582_v16  ;;  %v3080_v16 = vld [vmem:[%s3931_s1 + $0x408] sm:$0xff] }
  0x5d   :  { %1934 = vmatpush.bf16.msra.mxu3 %v3040_v59  ;;  %v171_v59 = vpack.c.bf16 %v3584_v17, %v3584_v17  ;;  %v3096_v17 = vld [vmem:[%s3931_s1 + $0x488] sm:$0xff] }
  0x5e   :  { %1896 = vmatpush.bf16.msra.mxu0 %v3015_v60  ;;  %v3085_v60 = vld [vmem:[%s3931_s1 + $0x430] sm:$0xff] }
  0x5f   :  { %1922 = vmatpush.bf16.msra.mxu2 %v3031_v61  ;;  %v3101_v61 = vld [vmem:[%s3931_s1 + $0x4b0] sm:$0xff] }
  0x60   :  { %1909 = vmatpush.bf16.msra.mxu1 %v3023_v2  ;;  %v3092_v2 = vld [vmem:[%s3931_s1 + $0x468] sm:$0xff] }
  0x61   :  { %1935 = vmatpush.bf16.msra.mxu3 %v3039_v3  ;;  %1897 = vmatmul.bf16.vlgmr.msra.gmra.mxu0 %v164_v6  ;;  %v3108_v3 = vld [vmem:[%s3931_s1 + $0x4e8] sm:$0xff]  ;;  %v3091_v6 = vld [vmem:[%s3931_s1 + $0x460] sm:$0xff] }
  0x62   :  { %1941 = vmatpush.bf16.msrb.mxu0 %v3054_v62  ;;  %1923 = vmatmul.bf16.vlgmr.msra.gmra.mxu2 %v166_v7  ;;  %v3093_v62 = vld [vmem:[%s3931_s1 + $0x470] sm:$0xff]  ;;  %v3107_v7 = vld [vmem:[%s3931_s1 + $0x4e0] sm:$0xff] }
  0x63   :  { %1967 = vmatpush.bf16.msrb.mxu2 %v3070_v1  ;;  %1910 = vmatmul.bf16.vlgmr.msra.gmra.mxu1 %v165_v12  ;;  %v3100_v1 = vld [vmem:[%s3931_s1 + $0x4a8] sm:$0xff]  ;;  %v3081_v12 = vld [vmem:[%s3931_s1 + $0x410] sm:$0xff] }
  0x64   :  { %1954 = vmatpush.bf16.msrb.mxu1 %v3062_v8  ;;  %1936 = vmatmul.bf16.vlgmr.msra.gmra.mxu3 %v167_v13  ;;  %v3082_v8 = vld [vmem:[%s3931_s1 + $0x418] sm:$0xff]  ;;  %v3097_v13 = vld [vmem:[%s3931_s1 + $0x490] sm:$0xff] }
  0x65   :  { %1980 = vmatpush.bf16.msrb.mxu3 %v3078_v9  ;;  %v3098_v9 = vld [vmem:[%s3931_s1 + $0x498] sm:$0xff] }
  0x66   :  { %1942 = vmatpush.bf16.msrb.mxu0 %v3053_v10  ;;  %v3090_v10 = vld [vmem:[%s3931_s1 + $0x458] sm:$0xff] }
  0x67   :  { %1968 = vmatpush.bf16.msrb.mxu2 %v3069_v11  ;;  %v3106_v11 = vld [vmem:[%s3931_s1 + $0x4d8] sm:$0xff] }
  0x68   :  { %1955 = vmatpush.bf16.msrb.mxu1 %v3061_v21  ;;  %v3095_v21 = vld [vmem:[%s3931_s1 + $0x480] sm:$0xff] }
  0x69   :  { %1981 = vmatpush.bf16.msrb.mxu3 %v3077_v22  ;;  %v3118_v22 = vld [vmem:[%s3931_s1 + $0x538] sm:$0xff] }
  0x6a   :  { %1943 = vmatpush.bf16.msrb.mxu0 %v3052_v24  ;;  %v120_v24 = vld.sshfl [vmem:[#allocation1 + $0x10] sm:$0xff pattern:$0x73625140] }
  0x6b   :  { %1969 = vmatpush.bf16.msrb.mxu2 %v3068_v25  ;;  %v3134_v25 = vld [vmem:[%s3931_s1 + $0x5b8] sm:$0xff] }
  0x6c   :  { %1956 = vmatpush.bf16.msrb.mxu1 %v3060_v26  ;;  %v3087_v26 = vld [vmem:[%s3931_s1 + $0x440] sm:$0xff] }
  0x6d   :  { %1982 = vmatpush.bf16.msrb.mxu3 %v3076_v27  ;;  %v3103_v27 = vld [vmem:[%s3931_s1 + $0x4c0] sm:$0xff] }
  0x6e   :  { %1944 = vmatpush.bf16.msrb.mxu0 %v3051_v28  ;;  %v119_v28 = vld.sshfl [vmem:[#allocation1 + $0x8] sm:$0xff pattern:$0x73625140] }
  0x6f   :  { %1970 = vmatpush.bf16.msrb.mxu2 %v3067_v29  ;;  %v121_v29 = vld.sshfl [vmem:[#allocation1 + $0x18] sm:$0xff pattern:$0x73625140] }
  0x70   :  { %1957 = vmatpush.bf16.msrb.mxu1 %v3059_v30  ;;  %v172_v30 = vpack.c.bf16 %v118_v23, %v118_v23 }
  0x71   :  { %1983 = vmatpush.bf16.msrb.mxu3 %v3075_v31  ;;  %v174_v31 = vpack.c.bf16 %v120_v24, %v120_v24 }
  0x72   :  { %1945 = vmatpush.bf16.msrb.mxu0 %v3050_v32  ;;  %v3126_v32 = vld [vmem:[%s3931_s1 + $0x578] sm:$0xff] }
  0x73   :  { %1971 = vmatpush.bf16.msrb.mxu2 %v3066_v33  ;;  %v3142_v33 = vld [vmem:[%s3931_s1 + $0x5f8] sm:$0xff] }
  0x74   :  { %1958 = vmatpush.bf16.msrb.mxu1 %v3058_v34  ;;  %v173_v34 = vpack.c.bf16 %v119_v28, %v119_v28  ;;  %v3147_v28 = vld [vmem:[%s3931_s1 + $0x620] sm:$0xff] }
  0x75   :  { %1984 = vmatpush.bf16.msrb.mxu3 %v3074_v35  ;;  %v175_v35 = vpack.c.bf16 %v121_v29, %v121_v29 }
  0x76   :  { %1946 = vmatpush.bf16.msrb.mxu0 %v3049_v36  ;;  %v3117_v36 = vld [vmem:[%s3931_s1 + $0x530] sm:$0xff] }
  0x77   :  { %1972 = vmatpush.bf16.msrb.mxu2 %v3065_v37  ;;  %v3133_v37 = vld [vmem:[%s3931_s1 + $0x5b0] sm:$0xff] }
  0x78   :  { %1959 = vmatpush.bf16.msrb.mxu1 %v3057_v38  ;;  %v3125_v38 = vld [vmem:[%s3931_s1 + $0x570] sm:$0xff] }
  0x79   :  { %1985 = vmatpush.bf16.msrb.mxu3 %v3073_v39  ;;  %v3141_v39 = vld [vmem:[%s3931_s1 + $0x5f0] sm:$0xff] }
  0x7a   :  { %1947 = vmatpush.bf16.msrb.mxu0 %v3048_v44  ;;  %v3154_v44 = vld [vmem:[%s3932_s2] ss:$0 sm:$0xff] }
  0x7b   :  { %1973 = vmatpush.bf16.msrb.mxu2 %v3064_v45  ;;  %v3115_v45 = vld [vmem:[%s3931_s1 + $0x520] sm:$0xff] }
  0x7c   :  { %1960 = vmatpush.bf16.msrb.mxu1 %v3056_v46  ;;  %v3131_v46 = vld [vmem:[%s3931_s1 + $0x5a0] sm:$0xff] }
  0x7d   :  { %1986 = vmatpush.bf16.msrb.mxu3 %v3072_v47 }
  0x7e   :  { %1948 = vmatpush.bf16.msrb.mxu0 %v3047_v48  ;;  %v3123_v48 = vld [vmem:[%s3931_s1 + $0x560] sm:$0xff] }
  0x7f   :  { %1974 = vmatpush.bf16.msrb.mxu2 %v3063_v49  ;;  %v3139_v49 = vld [vmem:[%s3931_s1 + $0x5e0] sm:$0xff] }
  0x80   :  { %1961 = vmatpush.bf16.msrb.mxu1 %v3055_v52  ;;  %v3114_v52 = vld [vmem:[%s3931_s1 + $0x518] sm:$0xff] }
  0x81   :  { %1987 = vmatpush.bf16.msrb.mxu3 %v3071_v53  ;;  %1949 = vmatmul.bf16.vlgmr.msrb.gmra.mxu0 %v168_v54  ;;  %v3130_v53 = vld [vmem:[%s3931_s1 + $0x598] sm:$0xff] }
  0x82   :  { %1993 = vmatpush.bf16.msra.mxu0 %v3086_v50  ;;  %1975 = vmatmul.bf16.vlgmr.msrb.gmra.mxu2 %v170_v55  ;;  %v3122_v55 = vld [vmem:[%s3931_s1 + $0x558] sm:$0xff] }
  0x83   :  { %2019 = vmatpush.bf16.msra.mxu2 %v3102_v51  ;;  %1962 = vmatmul.bf16.vlgmr.msrb.gmra.mxu1 %v169_v58  ;;  %v3113_v58 = vld [vmem:[%s3931_s1 + $0x510] sm:$0xff] }
  0x84   :  { %2006 = vmatpush.bf16.msra.mxu1 %v3094_v56  ;;  %1988 = vmatmul.bf16.vlgmr.msrb.gmra.mxu3 %v171_v59  ;;  %v3138_v56 = vld [vmem:[%s3931_s1 + $0x5d8] sm:$0xff]  ;;  %v3129_v59 = vld [vmem:[%s3931_s1 + $0x590] sm:$0xff] }
  0x85   :  { %2032 = vmatpush.bf16.msra.mxu3 %v3110_v57 }
  0x86   :  { %1994 = vmatpush.bf16.msra.mxu0 %v3085_v60 }
  0x87   :  { %2020 = vmatpush.bf16.msra.mxu2 %v3101_v61  ;;  %v3121_v61 = vld [vmem:[%s3931_s1 + $0x550] sm:$0xff] }
  0x88   :  { %2007 = vmatpush.bf16.msra.mxu1 %v3093_v62 }
  0x89   :  { %2033 = vmatpush.bf16.msra.mxu3 %v3109_v63 }
  0x8a   :  { %1995 = vmatpush.bf16.msra.mxu0 %v3084_v0  ;;  %v3137_v0 = vld [vmem:[%s3931_s1 + $0x5d0] sm:$0xff] }
  0x8b   :  { %2021 = vmatpush.bf16.msra.mxu2 %v3100_v1 }
  0x8c   :  { %2008 = vmatpush.bf16.msra.mxu1 %v3092_v2  ;;  %v21_v2 = vld [vmem:[%s3930_s0 + $0x30] sm:$0x3] }
  0x8d   :  { %2034 = vmatpush.bf16.msra.mxu3 %v3108_v3  ;;  %v28_v3 = vld [vmem:[%s3930_s0 + $0x62] sm:$0x3]  ;;  %126 = vst [vmem:[#allocation1] ss:$4 sm:$0xff] %v21_v2 }
  0x8e   :  { %1996 = vmatpush.bf16.msra.mxu0 %v3083_v4  ;;  %127 = vst [vmem:[#allocation1 + $0x1] ss:$4 sm:$0xff] %v28_v3 }
  0x8f   :  { %2022 = vmatpush.bf16.msra.mxu2 %v3099_v5  ;;  %v35_v5 = vld [vmem:[%s3930_s0 + $0x94] sm:$0x3] }
  0x90   :  { %2009 = vmatpush.bf16.msra.mxu1 %v3091_v6  ;;  %v42_v6 = vld [vmem:[%s3930_s0 + $0xc6] sm:$0x3]  ;;  %128 = vst [vmem:[#allocation1 + $0x2] ss:$4 sm:$0xff] %v35_v5 }
  0x91   :  { %2035 = vmatpush.bf16.msra.mxu3 %v3107_v7  ;;  %v3112_v7 = vld [vmem:[%s3931_s1 + $0x508] sm:$0xff]  ;;  %129 = vst [vmem:[#allocation1 + $0x3] ss:$4 sm:$0xff] %v42_v6 }
  0x92   :  { %1997 = vmatpush.bf16.msra.mxu0 %v3082_v8  ;;  %v3128_v8 = vld [vmem:[%s3931_s1 + $0x588] sm:$0xff] }
  0x93   :  { %2023 = vmatpush.bf16.msra.mxu2 %v3098_v9  ;;  %v3120_v9 = vld [vmem:[%s3931_s1 + $0x548] sm:$0xff] }
  0x94   :  { %2010 = vmatpush.bf16.msra.mxu1 %v3090_v10  ;;  %v3136_v10 = vld [vmem:[%s3931_s1 + $0x5c8] sm:$0xff] }
  0x95   :  { %2036 = vmatpush.bf16.msra.mxu3 %v3106_v11  ;;  %v3111_v11 = vld [vmem:[%s3931_s1 + $0x500] sm:$0xff] }
  0x96   :  { %1998 = vmatpush.bf16.msra.mxu0 %v3081_v12  ;;  %v3127_v12 = vld [vmem:[%s3931_s1 + $0x580] sm:$0xff] }
  0x97   :  { %2024 = vmatpush.bf16.msra.mxu2 %v3097_v13 }
  0x98   :  { %2011 = vmatpush.bf16.msra.mxu1 %v3089_v14  ;;  %v122_v14 = vld.sshfl [vmem:[#allocation1 + $0x20] sm:$0xff pattern:$0x73625140] }
  0x99   :  { %2037 = vmatpush.bf16.msra.mxu3 %v3105_v15  ;;  %v124_v15 = vld.sshfl [vmem:[#allocation1 + $0x30] sm:$0xff pattern:$0x73625140] }
  0x9a   :  { %1999 = vmatpush.bf16.msra.mxu0 %v3080_v16  ;;  %v3150_v16 = vld [vmem:[%s3931_s1 + $0x638] sm:$0xff]  ;;  %v178_v23 = vpack.c.bf16 %v124_v15, %v124_v15 }
  0x9b   :  { %2025 = vmatpush.bf16.msra.mxu2 %v3096_v17  ;;  %v3119_v17 = vld [vmem:[%s3931_s1 + $0x540] sm:$0xff] }
  0x9c   :  { %2012 = vmatpush.bf16.msra.mxu1 %v3088_v18  ;;  %v3135_v18 = vld [vmem:[%s3931_s1 + $0x5c0] sm:$0xff] }
  0x9d   :  { %2038 = vmatpush.bf16.msra.mxu3 %v3104_v19 }
  0x9e   :  { %2000 = vmatpush.bf16.msra.mxu0 %v3079_v20  ;;  %v1794_v47 = vpop.f32.mrf.mxu0  ;;  %v123_v20 = vld.sshfl [vmem:[#allocation1 + $0x28] sm:$0xff pattern:$0x73625140] }
  0x9f   :  { %2026 = vmatpush.bf16.msra.mxu2 %v3095_v21  ;;  %v1795_v50 = vadd.f32 %v3154_v44, %v1794_v47  ;;  %v125_v21 = vld.sshfl [vmem:[#allocation1 + $0x38] sm:$0xff pattern:$0x73625140]  ;;  %v177_v24 = vpack.c.bf16 %v123_v20, %v123_v20  ;;  %v130_v44 = vld.sshfl [vmem:[#allocation1] sm:$0xff pattern:$0x73625140] }
  0xa0   :  { %2013 = vmatpush.bf16.msra.mxu1 %v3087_v26  ;;  %v1807_v51 = vpop.f32.mrf.mxu1  ;;  %v3149_v26 = vld [vmem:[%s3931_s1 + $0x630] sm:$0xff] }
  0xa1   :  { %2039 = vmatpush.bf16.msra.mxu3 %v3103_v27  ;;  %2001 = vmatmul.bf16.vlgmr.msra.gmra.mxu0 %v172_v30  ;;  %v1808_v54 = vadd.f32 %v1807_v51, %v1795_v50  ;;  %v3148_v27 = vld [vmem:[%s3931_s1 + $0x628] sm:$0xff] }
  0xa2   :  { %2045 = vmatpush.bf16.msrb.mxu0 %v3118_v22  ;;  %2027 = vmatmul.bf16.vlgmr.msra.gmra.mxu2 %v174_v31  ;;  %v176_v22 = vpack.c.bf16 %v122_v14, %v122_v14 }
  0xa3   :  { %2071 = vmatpush.bf16.msrb.mxu2 %v3134_v25  ;;  %2014 = vmatmul.bf16.vlgmr.msra.gmra.mxu1 %v173_v34  ;;  %v179_v25 = vpack.c.bf16 %v125_v21, %v125_v21 }
  0xa4   :  { %2058 = vmatpush.bf16.msrb.mxu1 %v3126_v32  ;;  %2040 = vmatmul.bf16.vlgmr.msra.gmra.mxu3 %v175_v35 }
  0xa5   :  { %2084 = vmatpush.bf16.msrb.mxu3 %v3142_v33  ;;  %v1820_v57 = vpop.f32.mrf.mxu2  ;;  %v3146_v33 = vld [vmem:[%s3931_s1 + $0x618] sm:$0xff] }
  0xa6   :  { %2046 = vmatpush.bf16.msrb.mxu0 %v3117_v36  ;;  %v1821_v60 = vadd.f32 %v1820_v57, %v1808_v54  ;;  %v1796_v63 = vpop.f32.mrf.mxu0  ;;  %v3145_v36 = vld [vmem:[%s3931_s1 + $0x610] sm:$0xff] }
  0xa7   :  { %2072 = vmatpush.bf16.msrb.mxu2 %v3133_v37  ;;  %v1833_v62 = vpop.f32.mrf.mxu3 }
  0xa8   :  { %2059 = vmatpush.bf16.msrb.mxu1 %v3125_v38  ;;  %v1834_v1 = vadd.f32 %v1833_v62, %v1821_v60  ;;  %v1809_v4 = vpop.f32.mrf.mxu1 }
  0xa9   :  { %2085 = vmatpush.bf16.msrb.mxu3 %v3141_v39 }
  0xaa   :  { %2047 = vmatpush.bf16.msrb.mxu0 %v3116_v40 }
  0xab   :  { %2073 = vmatpush.bf16.msrb.mxu2 %v3132_v41  ;;  %v3144_v41 = vld [vmem:[%s3931_s1 + $0x608] sm:$0xff] }
  0xac   :  { %2060 = vmatpush.bf16.msrb.mxu1 %v3124_v42 }
  0xad   :  { %2086 = vmatpush.bf16.msrb.mxu3 %v3140_v43  ;;  %v1822_v13 = vpop.f32.mrf.mxu2  ;;  %v3143_v43 = vld [vmem:[%s3931_s1 + $0x600] sm:$0xff] }
  0xae   :  { %2048 = vmatpush.bf16.msrb.mxu0 %v3115_v45 }
  0xaf   :  { %2074 = vmatpush.bf16.msrb.mxu2 %v3131_v46  ;;  %v1835_v19 = vpop.f32.mrf.mxu3  ;;  %v180_v46 = vpack.c.bf16 %v130_v44, %v130_v44 }
  0xb0   :  { %2061 = vmatpush.bf16.msrb.mxu1 %v3123_v48 }
  0xb1   :  { %2087 = vmatpush.bf16.msrb.mxu3 %v3139_v49 }
  0xb2   :  { %2049 = vmatpush.bf16.msrb.mxu0 %v3114_v52 }
  0xb3   :  { %2075 = vmatpush.bf16.msrb.mxu2 %v3130_v53 }
  0xb4   :  { %2062 = vmatpush.bf16.msrb.mxu1 %v3122_v55 }
  0xb5   :  { %2088 = vmatpush.bf16.msrb.mxu3 %v3138_v56 }
  0xb6   :  { %2050 = vmatpush.bf16.msrb.mxu0 %v3113_v58 }
  0xb7   :  { %2076 = vmatpush.bf16.msrb.mxu2 %v3129_v59 }
  0xb8   :  { %2063 = vmatpush.bf16.msrb.mxu1 %v3121_v61 }
  0xb9   :  { %2089 = vmatpush.bf16.msrb.mxu3 %v3137_v0 }
  0xba   :  { %2051 = vmatpush.bf16.msrb.mxu0 %v3112_v7 }
  0xbb   :  { %2077 = vmatpush.bf16.msrb.mxu2 %v3128_v8 }
  0xbc   :  { %2064 = vmatpush.bf16.msrb.mxu1 %v3120_v9 }
  0xbd   :  { %2090 = vmatpush.bf16.msrb.mxu3 %v3136_v10 }
  0xbe   :  { %2052 = vmatpush.bf16.msrb.mxu0 %v3111_v11  ;;  %v1846_v29 = vpop.f32.mrf.mxu0 }
  0xbf   :  { %2078 = vmatpush.bf16.msrb.mxu2 %v3127_v12  ;;  %v1847_v30 = vadd.f32 %v1846_v29, %v1834_v1 }
  0xc0   :  { %2065 = vmatpush.bf16.msrb.mxu1 %v3119_v17  ;;  %v1859_v31 = vpop.f32.mrf.mxu1 }
  0xc1   :  { %2091 = vmatpush.bf16.msrb.mxu3 %v3135_v18  ;;  %2053 = vmatmul.bf16.vlgmr.msrb.gmra.mxu0 %v176_v22  ;;  %v1860_v32 = vadd.f32 %v1859_v31, %v1847_v30 }
  0xc2   :  { %2097 = vmatpush.bf16.msra.mxu0 %v3150_v16  ;;  %2079 = vmatmul.bf16.vlgmr.msrb.gmra.mxu2 %v178_v23 }
  0xc3   :  { %2066 = vmatmul.bf16.vlgmr.msrb.gmra.mxu1 %v177_v24 }
  0xc4   :  { %2092 = vmatmul.bf16.vlgmr.msrb.gmra.mxu3 %v179_v25 }
  0xc5   :  { %v1872_v34 = vpop.f32.mrf.mxu2 }
  0xc6   :  { %2098 = vmatpush.bf16.msra.mxu0 %v3149_v26  ;;  %v1873_v35 = vadd.f32 %v1872_v34, %v1860_v32  ;;  %v1848_v38 = vpop.f32.mrf.mxu0 }
  0xc7   :  { %v1885_v37 = vpop.f32.mrf.mxu3 }
  0xc8   :  { %v1886_v39 = vadd.f32 %v1885_v37, %v1873_v35  ;;  %v1861_v40 = vpop.f32.mrf.mxu1 }
  0xca   :  { %2099 = vmatpush.bf16.msra.mxu0 %v3148_v27 }
  0xcd   :  { %v1874_v42 = vpop.f32.mrf.mxu2 }
  0xce   :  { %2100 = vmatpush.bf16.msra.mxu0 %v3147_v28 }
  0xcf   :  { %v1887_v45 = vpop.f32.mrf.mxu3 }
  0xd2   :  { %2101 = vmatpush.bf16.msra.mxu0 %v3146_v33 }
  0xd6   :  { %2102 = vmatpush.bf16.msra.mxu0 %v3145_v36 }
  0xda   :  { %2103 = vmatpush.bf16.msra.mxu0 %v3144_v41 }
  0xde   :  { %2104 = vmatpush.bf16.msra.mxu0 %v3143_v43  ;;  %v1898_v47 = vpop.f32.mrf.mxu0 }
  0xdf   :  { %v1899_v48 = vadd.f32 %v1898_v47, %v1886_v39 }
  0xe0   :  { %v1911_v49 = vpop.f32.mrf.mxu1 }
  0xe1   :  { %2105 = vmatmul.bf16.vlgmr.msra.gmra.mxu0 %v180_v46  ;;  %v1912_v50 = vadd.f32 %v1911_v49, %v1899_v48 }
  0xe5   :  { %v1924_v51 = vpop.f32.mrf.mxu2 }
  0xe6   :  { %v1925_v52 = vadd.f32 %v1924_v51, %v1912_v50  ;;  %v1900_v54 = vpop.f32.mrf.mxu0 }
  0xe7   :  { %v1937_v53 = vpop.f32.mrf.mxu3 }
  0xe8   :  { %v1938_v55 = vadd.f32 %v1937_v53, %v1925_v52  ;;  %v1913_v56 = vpop.f32.mrf.mxu1 }
  0xed   :  { %v1926_v57 = vpop.f32.mrf.mxu2 }
  0xef   :  { %v1939_v58 = vpop.f32.mrf.mxu3 }
  0xfe   :  { %v1950_v59 = vpop.f32.mrf.mxu0 }
  0xff   :  { %v1951_v60 = vadd.f32 %v1950_v59, %v1938_v55 }
 0x100   :  { %v1963_v61 = vpop.f32.mrf.mxu1 }
 0x101   :  { %v1964_v62 = vadd.f32 %v1963_v61, %v1951_v60 }
 0x105   :  { %v1976_v63 = vpop.f32.mrf.mxu2 }
 0x106   :  { %v1977_v0 = vadd.f32 %v1976_v63, %v1964_v62  ;;  %v1952_v2 = vpop.f32.mrf.mxu0 }
 0x107   :  { %v1989_v1 = vpop.f32.mrf.mxu3 }
 0x108   :  { %v1990_v3 = vadd.f32 %v1989_v1, %v1977_v0  ;;  %v1965_v4 = vpop.f32.mrf.mxu1 }
 0x10d   :  { %v1978_v5 = vpop.f32.mrf.mxu2 }
 0x10f   :  { %v1991_v6 = vpop.f32.mrf.mxu3 }
 0x11e   :  { %v2002_v7 = vpop.f32.mrf.mxu0 }
 0x11f   :  { %v2003_v18 = vadd.f32 %v2002_v7, %v1990_v3 }
 0x120   :  { %v2015_v8 = vpop.f32.mrf.mxu1 }
 0x121   :  { %v2016_v22 = vadd.f32 %v2015_v8, %v2003_v18 }
 0x125   :  { %v2028_v9 = vpop.f32.mrf.mxu2 }
 0x126   :  { %v2004_v11 = vpop.f32.mrf.mxu0  ;;  %v2029_v23 = vadd.f32 %v2028_v9, %v2016_v22 }
 0x127   :  { %v2041_v10 = vpop.f32.mrf.mxu3 }
 0x128   :  { %v2017_v12 = vpop.f32.mrf.mxu1  ;;  %v2042_v26 = vadd.f32 %v2041_v10, %v2029_v23 }
 0x12d   :  { %v2030_v13 = vpop.f32.mrf.mxu2 }
 0x12f   :  { %v2043_v14 = vpop.f32.mrf.mxu3 }
 0x13e   :  { %v2054_v15 = vpop.f32.mrf.mxu0 }
 0x13f   :  { %v2055_v27 = vadd.f32 %v2054_v15, %v2042_v26 }
 0x140   :  { %v2067_v16 = vpop.f32.mrf.mxu1 }
 0x141   :  { %v2068_v28 = vadd.f32 %v2067_v16, %v2055_v27 }
 0x145   :  { %v2080_v17 = vpop.f32.mrf.mxu2 }
 0x146   :  { %v2056_v20 = vpop.f32.mrf.mxu0  ;;  %v2081_v29 = vadd.f32 %v2080_v17, %v2068_v28 }
 0x147   :  { %v2093_v19 = vpop.f32.mrf.mxu3 }
 0x148   :  { %v2069_v21 = vpop.f32.mrf.mxu1  ;;  %v2094_v30 = vadd.f32 %v2093_v19, %v2081_v29 }
 0x14d   :  { %v2082_v24 = vpop.f32.mrf.mxu2 }
 0x14f   :  { %v2095_v25 = vpop.f32.mrf.mxu3 }
 0x15e   :  { %v2106_v31 = vpop.f32.mrf.mxu0 }
 0x15f   :  { %v2107_v32 = vadd.f32 %v2106_v31, %v2094_v30 }
 0x161   :  { %2110 = vmax.xlane.f32.xlu0 %v2107_v32 }
 0x166   :  { %v2108_v33 = vpop.f32.mrf.mxu0 }
 0x1d4   :  { %v2111_v34 = vpop.xlane.xlu0 %2110 }
 0x1d5   :  { %v2112_v35 = vsub.f32 %v2107_v32, %v2111_v34 }
 0x1d7   :  { %v2113_v36 = vmul.f32 1.442695, %v2112_v35 }
 0x1d9   :  { %3155 = vpow2.f32 %v2113_v36 }
 0x1df   :  { %v3156_v37 = vpop.eup %3155 }
 0x1e0   :  { %2115 = vadd.xlane.f32.xlu0 %v3156_v37 }
 0x253   :  { %v2116_v38 = vpop.xlane.xlu0 %2115 }
 0x254   :  { %3157 = vrcp.f32 %v2116_v38  ;;  %v2128_v42 = vand.u32 2147483648, %v2116_v38  ;;  %v2126_v44 = vand.u32 2147483647, %v2116_v38  ;;  %vm2122_vm1 = vweird.f32 %v2116_v38 }
 0x256   :  { %v2129_v46 = vor.u32 1.1754944e-38, %v2128_v42  ;;  %vm2127_vm3 = vcmp.eq.f32.partialorder %v2126_v44, 8.507059e+37 }
 0x25a   :  { %v3158_v39 = vpop.eup %3157 }
 0x25b   :  { %v2118_v40 = vmul.f32 %v3158_v39, %v2116_v38  ;;  %vm2123_vm0 = vweird.f32 %v3158_v39 }
 0x25c   :  { %vm2124_vm2 = vmor %vm2122_vm1, %vm2123_vm0 }
 0x25d   :  { %v2119_v41 = vsub.f32 1.0, %v2118_v40 }
 0x25f   :  { %v2120_v43 = vmul.f32 %v3158_v39, %v2119_v41 }
 0x261   :  { %v2121_v45 = vadd.f32 %v3158_v39, %v2120_v43 }
 0x263   :  { %v2125_v47 = vsel %vm2124_vm2, %v3158_v39, %v2121_v45 }
 0x264   :  { %v2130_v48 = vsel %vm2127_vm3, %v2129_v46, %v2125_v47 }
 0x265   :  { %v2131_v49 = vmul.f32 %v3156_v37, %v2130_v48 }
 0x267   :  { %2132 = vst [vmem:[#allocation2] sm:$0xff] %v2131_v49 }
 0x268   :  { %2136 = vsyncadd [#allocation3], 96  ;;  %s2139_s2 = sshll.u32 %s3933_s3, 4  ;;  %s3185_s9 = smov [#allocation2]   ;;  %s2140_s2 = int_to_ptr.hbm [resolvable:$true] %s2139_s2 }
 0x269   :  { %s2137_s0 = sshll.u32 %s3185_s9, 4  ;;  %s3186_s10 = smov 32   ;;  %s2138_s0 = int_to_ptr.vmem [resolvable:$true] %s2137_s0 }
 0x26a   :  { %s3187_s11 = smov 2  }
 0x26b   :  { %2145 = dma.vmem_to_hbm [thread:$0]  %s2138_s0, 32, %s2140_s2, [#allocation3], %s3186_s10, %s3186_s10, %s3187_s11  }
 0x26c   :  { %3183 = dma.done.wait [#allocation3], 128  }
 0x26d   :  { %3184 = vsyncadd [#allocation3], 4294967168 }
 0x26e   :  { %2150 = vsyncpa [#allocation3], 1 }

</bundles_post_ra>
